<compile_context>
chip_gen: v6e
topology: v6e:2x2x1
jax: 0.10.0
libtpu: 0.0.40
codegen_flags: <defaults>
</compile_context>

<pallas_src>
import jax
import jax.numpy as jnp
from jax.experimental import pallas as pl
from jax.experimental.pallas import tpu as pltpu

LANE = 128
SUBLANE = 8


def _round_up(n, m):
    return ((n + m - 1) // m) * m


def mlp_kernel(x_ref, w1_ref, b1_ref, w2_ref, b2_ref, o_ref):
    # fc1: [T, D] @ [D, Hp] -> f32 accumulation on the MXU; bias + ReLU in f32.
    h = jnp.dot(x_ref[...], w1_ref[...], preferred_element_type=jnp.float32)
    h = jnp.maximum(h + b1_ref[...], 0.0)
    # fc2: [T, Hp] @ [Hp, C] -> f32; single store of real-width (C=5) logits.
    out = jnp.dot(h.astype(w2_ref.dtype), w2_ref[...],
                  preferred_element_type=jnp.float32)
    o_ref[...] = (out + b2_ref[...]).astype(o_ref.dtype)


def prepare_params(w1, b1, w2, b2, *, param_dtype=jnp.bfloat16):
    """Pad/cast parameters ONCE (hoisted out of the per-call wrapper).

    w1:[D,H], b1:[H] or [1,H], w2:[H,C], b2:[C] or [1,C].
    H is padded to a multiple of 128 (lane-dense intermediate); D and C are
    left at their true sizes.  Zero padding keeps the math identical."""
    D, H = w1.shape
    C = w2.shape[1]
    Hp = _round_up(H, LANE)
    w1p = jnp.pad(w1.astype(param_dtype), ((0, 0), (0, Hp - H)))
    b1p = jnp.pad(jnp.reshape(b1, (1, H)).astype(jnp.float32),
                  ((0, 0), (0, Hp - H)))
    w2p = jnp.pad(w2.astype(param_dtype), ((0, Hp - H), (0, 0)))
    b2p = jnp.reshape(b2, (1, C)).astype(jnp.float32)
    return w1p, b1p, w2p, b2p


def _cost(B, D, Hp, C, x_bytes, w1p, b1p, w2p, b2p):
    return pl.CostEstimate(
        flops=2 * B * (D * Hp + Hp * C),
        transcendentals=0,
        bytes_accessed=int(x_bytes
                           + w1p.size * w1p.dtype.itemsize
                           + b1p.size * b1p.dtype.itemsize
                           + w2p.size * w2p.dtype.itemsize
                           + b2p.size * b2p.dtype.itemsize
                           + B * C * 4),
    )


def organ_classifier_forward(x, w1p, b1p, w2p, b2p, *, batch_tile=512):
    """x: [B, D] (bf16 or f32); params from prepare_params. Returns [B, C] f32."""
    B, D = x.shape
    Hp = w1p.shape[1]
    C = w2p.shape[1]

    tiled = B >= 128  # path choice decoupled from the tile size

    if not tiled:
        # Small batch: grid-free, whole (unpadded) operands as single
        # full-array VMEM blocks -> no pipeline prologue/epilogue.
        cost = _cost(B, D, Hp, C, x.size * x.dtype.itemsize,
                     w1p, b1p, w2p, b2p)
        return pl.pallas_call(
            mlp_kernel,
            out_shape=jax.ShapeDtypeStruct((B, C), jnp.float32),
            in_specs=[pl.BlockSpec(memory_space=pltpu.MemorySpace.VMEM)] * 5,
            out_specs=pl.BlockSpec(memory_space=pltpu.MemorySpace.VMEM),
            cost_estimate=cost,
        )(x, w1p, b1p, w2p, b2p)

    # Batch-tiled path: grid over batch tiles, weights resident across tiles.
    tile = min(batch_tile, _round_up(B, LANE))
    # Keep >= 2 tiles when tiles can stay >= 128 rows: the "parallel" axis is
    # what shards batch tiles over the 2 TensorCores on v7x (negligible cost
    # on single-TC v5e/v6e).
    if _round_up(B, tile) // tile < 2 and tile >= 2 * LANE:
        tile = _round_up(tile // 2, LANE)
    Bp = _round_up(B, tile)
    xp = x if Bp == B else jnp.pad(x, ((0, Bp - B), (0, 0)))
    nb = Bp // tile

    cost = _cost(Bp, D, Hp, C, xp.size * xp.dtype.itemsize,
                 w1p, b1p, w2p, b2p)
    out = pl.pallas_call(
        mlp_kernel,
        out_shape=jax.ShapeDtypeStruct((Bp, C), jnp.float32),
        grid=(nb,),
        in_specs=[
            pl.BlockSpec((tile, D), lambda i: (i, 0)),  # x: last dim = full D
            pl.BlockSpec((D, Hp), lambda i: (0, 0)),    # resident weights
            pl.BlockSpec((1, Hp), lambda i: (0, 0)),
            pl.BlockSpec((Hp, C), lambda i: (0, 0)),    # last dim = full C
            pl.BlockSpec((1, C), lambda i: (0, 0)),
        ],
        out_specs=pl.BlockSpec((tile, C), lambda i: (i, 0)),  # real-width logits
        compiler_params=pltpu.CompilerParams(
            dimension_semantics=("parallel",)),
        cost_estimate=cost,
    )(xp, w1p, b1p, w2p, b2p)
    return out if Bp == B else out[:B]


def init_params(key, input_size, hidden_size, num_classes):
    """Deterministic PyTorch-style (uniform +/- 1/sqrt(fan_in)) init.

    Weights stored as [in, out] (transposed vs. PyTorch's [out, in])."""
    k1, k2, k3, k4 = jax.random.split(key, 4)
    bound1 = 1.0 / jnp.sqrt(jnp.float32(input_size))
    bound2 = 1.0 / jnp.sqrt(jnp.float32(hidden_size))
    w1 = jax.random.uniform(k1, (input_size, hidden_size), jnp.float32,
                            -bound1, bound1)
    b1 = jax.random.uniform(k2, (1, hidden_size), jnp.float32, -bound1, bound1)
    w2 = jax.random.uniform(k3, (hidden_size, num_classes), jnp.float32,
                            -bound2, bound2)
    b2 = jax.random.uniform(k4, (1, num_classes), jnp.float32, -bound2, bound2)
    return w1, b1, w2, b2


def _reference(x, w1, b1, w2, b2):
    return jnp.maximum(x @ w1 + b1, 0.0) @ w2 + b2


if __name__ == "__main__":
    # Small shapes consistent with the module: flattened image features/row.
    input_size = 64      # images.shape[1] (flattened pixels per sample)
    hidden_size = 100    # as in the reference script
    num_classes = 5

    key = jax.random.PRNGKey(0)
    kx, kp, kx2 = jax.random.split(key, 3)
    w1, b1, w2, b2 = init_params(kp, input_size, hidden_size, num_classes)
    # Pad + cast weights ONCE (not per forward call).
    w1p, b1p, w2p, b2p = prepare_params(w1, b1, w2, b2)

    # f32 reference built from the same bf16-rounded parameters.
    w1r = w1p[:, :hidden_size].astype(jnp.float32)
    w2r = w2p[:hidden_size, :].astype(jnp.float32)
    b1r = b1p[:, :hidden_size]
    b2r = b2p

    # 1) Small-batch (grid-free) path; x arrives bf16 from the producer.
    x_small = jax.random.normal(kx, (8, input_size), jnp.float32).astype(
        jnp.bfloat16)
    logits_small = jax.block_until_ready(
        organ_classifier_forward(x_small, w1p, b1p, w2p, b2p))
    ref_small = _reference(x_small.astype(jnp.float32), w1r, b1r, w2r, b2r)
    assert logits_small.shape == (8, num_classes)
    assert logits_small.dtype == jnp.float32
    assert jnp.allclose(logits_small, ref_small, atol=2e-2, rtol=2e-2)

    # 2) Batch-tiled ("parallel" grid, >= 2 tiles) path.
    x_big = jax.random.normal(kx2, (1024, input_size), jnp.float32).astype(
        jnp.bfloat16)
    logits_big = jax.block_until_ready(
        organ_classifier_forward(x_big, w1p, b1p, w2p, b2p))
    ref_big = _reference(x_big.astype(jnp.float32), w1r, b1r, w2r, b2r)
    assert logits_big.shape == (1024, num_classes)
    assert jnp.allclose(logits_big, ref_big, atol=2e-2, rtol=2e-2)

    print("KERNEL_OK")
</pallas_src>

<mosaic_0001>
module attributes {stable_mosaic.version = 11 : i64} {
  func.func @mlp_kernel(%arg0: memref<8x64xbf16, #tpu.memory_space<vmem>>, %arg1: memref<64x128xbf16, #tpu.memory_space<vmem>>, %arg2: memref<1x128xf32, #tpu.memory_space<vmem>>, %arg3: memref<128x5xbf16, #tpu.memory_space<vmem>>, %arg4: memref<1x5xf32, #tpu.memory_space<vmem>>, %arg5: memref<8x5xf32, #tpu.memory_space<vmem>>) attributes {dimension_semantics = [], scalar_prefetch = 0 : i64, scratch_operands = 0 : i64, tpu.core_type = #tpu.core_type<tc>} {
    %c0 = arith.constant 0 : index
    %c0_0 = arith.constant 0 : index
    %0 = vector.load %arg0[%c0, %c0_0] : memref<8x64xbf16, #tpu.memory_space<vmem>>, vector<8x64xbf16>
    %c0_1 = arith.constant 0 : index
    %c0_2 = arith.constant 0 : index
    %1 = vector.load %arg1[%c0_1, %c0_2] : memref<64x128xbf16, #tpu.memory_space<vmem>>, vector<64x128xbf16>
    %cst = arith.constant dense<0.000000e+00> : vector<8x128xf32>
    %2 = tpu.matmul %0, %1, %cst {dimension_numbers = #tpu.dot_dimension_numbers<[1], [0], [0], [1], [0, 0, 1, 1], [], []>} : vector<8x64xbf16>, vector<64x128xbf16>, vector<8x128xf32> -> vector<8x128xf32>
    %c0_3 = arith.constant 0 : index
    %c0_4 = arith.constant 0 : index
    %3 = vector.load %arg2[%c0_3, %c0_4] : memref<1x128xf32, #tpu.memory_space<vmem>>, vector<1x128xf32>
    %4 = vector.broadcast %3 : vector<1x128xf32> to vector<8x128xf32>
    %5 = arith.addf %2, %4 : vector<8x128xf32>
    %cst_5 = arith.constant 0.000000e+00 : f32
    %6 = vector.broadcast %cst_5 : f32 to vector<8x128xf32>
    %7 = arith.maximumf %5, %6 : vector<8x128xf32>
    %8 = arith.truncf %7 : vector<8x128xf32> to vector<8x128xbf16>
    %c0_6 = arith.constant 0 : index
    %c0_7 = arith.constant 0 : index
    %9 = vector.load %arg3[%c0_6, %c0_7] : memref<128x5xbf16, #tpu.memory_space<vmem>>, vector<128x5xbf16>
    %cst_8 = arith.constant dense<0.000000e+00> : vector<8x5xf32>
    %10 = tpu.matmul %8, %9, %cst_8 {dimension_numbers = #tpu.dot_dimension_numbers<[1], [0], [0], [1], [0, 0, 1, 1], [], []>} : vector<8x128xbf16>, vector<128x5xbf16>, vector<8x5xf32> -> vector<8x5xf32>
    %c0_9 = arith.constant 0 : index
    %c0_10 = arith.constant 0 : index
    %11 = vector.load %arg4[%c0_9, %c0_10] : memref<1x5xf32, #tpu.memory_space<vmem>>, vector<1x5xf32>
    %12 = vector.broadcast %11 : vector<1x5xf32> to vector<8x5xf32>
    %13 = arith.addf %10, %12 : vector<8x5xf32>
    %c0_11 = arith.constant 0 : index
    %c0_12 = arith.constant 0 : index
    %14 = vector.load %arg5[%c0_11, %c0_12] : memref<8x5xf32, #tpu.memory_space<vmem>>, vector<8x5xf32>
    tpu.vector_store %arg5[%c0_11, %c0_12], %13 {strides = array<i32>} : memref<8x5xf32, #tpu.memory_space<vmem>>, vector<8x5xf32>,
    return
  }
}

</mosaic_0001>

<bundles_post_ra>
// kernel: tpu_custom_call.1
= control target key start
LH: loop header
LB: loop body
LE: loop exit
PB: predicated region body
PF: predicated region fallthrough
CT: control target
= control target key end

     0   :  { %v333_v1 = vmov 0.0   ;;  %vm334_vm0 = vmmov 0   ;;  %s414_s0 = inlined_call_operand.vmem [shape: bf16[8,64], index: 0, kind: input, shape index: {}]   ;;  %s415_s1 = inlined_call_operand.vmem [shape: bf16[64,128], index: 1, kind: input, shape index: {}]   ;;  %s416_s2 = inlined_call_operand.vmem [shape: f32[1,128], index: 2, kind: input, shape index: {}]   ;;  %s417_s3 = inlined_call_operand.vmem [shape: bf16[128,5], index: 3, kind: input, shape index: {}]   ;;  %s418_s4 = inlined_call_operand.vmem [shape: f32[1,5], index: 4, kind: input, shape index: {}]   ;;  %s419_s5 = inlined_call_operand.hbm [shape: f32[8,5], index: 5, kind: output, shape index: {}]  }
   0x1   :  { %v299_v0 = vld [vmem:[%s415_s1 + $0x18] sm:$0xff]   ;;  %264 = vmatprep.subr.bf16.mxu0 %v333_v1  ;;  %276 = vmatprep.subr.bf16.mxu1 %v333_v1  ;;  %v300_v2 = vld [vmem:[%s415_s1 + $0x10] sm:$0xff]   ;;  %v301_v4 = vld [vmem:[%s415_s1 + $0x8] sm:$0xff]  }
   0x2   :  { %265 = vmatpush3.bf16.msra.mxu0 %v299_v0  ;;  %272 = vmatprep.mubr.msk.bf16.mxu0 %vm334_vm0, %v333_v1  ;;  %v303_v3 = vld [vmem:[%s417_s3 + $0x38] sm:$0xff]   ;;  %v304_v5 = vld [vmem:[%s417_s3 + $0x30] sm:$0xff]   ;;  %v302_v6 = vld [vmem:[%s415_s1] sm:$0xff]  }
   0x3   :  { %266 = vmatprep.subr.bf16.mxu0 %v333_v1  ;;  %292 = vmatprep.mubr.msk.bf16.mxu1 %vm334_vm0, %v333_v1  ;;  %v305_v7 = vld [vmem:[%s417_s3 + $0x28] sm:$0xff]  }
   0x4   :  { %277 = vmatpush3.bf16.msra.mxu1 %v303_v3 }
   0x5   :  { %278 = vmatprep.subr.bf16.mxu1 %v333_v1 }
   0x6   :  { %267 = vmatpush3.bf16.msra.mxu0 %v300_v2 }
   0x7   :  { %268 = vmatprep.subr.bf16.mxu0 %v333_v1 }
   0x8   :  { %279 = vmatpush3.bf16.msra.mxu1 %v304_v5 }
   0x9   :  { %280 = vmatprep.subr.bf16.mxu1 %v333_v1 }
   0xa   :  { %269 = vmatpush3.bf16.msra.mxu0 %v301_v4 }
   0xb   :  { %270 = vmatprep.subr.bf16.mxu0 %v333_v1 }
   0xc   :  { %10 = vsyncpa [#allocation3], 0  ;;  %v22_v8 = vld [vmem:[%s414_s0] sm:$0xf]  ;;  %vm62_vm1 = vcmask 523264   ;;  %281 = vmatpush3.bf16.msra.mxu1 %v305_v7  ;;  %v307_v10 = vld [vmem:[%s417_s3 + $0x18] sm:$0xff]  }
   0xd   :  { %v306_v9 = vld [vmem:[%s417_s3 + $0x20] sm:$0xff]   ;;  %282 = vmatprep.subr.bf16.mxu1 %v333_v1  ;;  %v308_v11 = vld [vmem:[%s417_s3 + $0x10] sm:$0xff]   ;;  %v309_v12 = vld [vmem:[%s417_s3 + $0x8] sm:$0xff]   ;;  %s335_s21 = smov [#allocation2]   ;;  %vm219_vm2 = vcmask 39936  }
   0xe   :  { %271 = vmatpush3.bf16.msra.mxu0 %v302_v6  ;;  %v310_v13 = vld [vmem:[%s417_s3] sm:$0xff]   ;;  %s227_s22 = sshll.u32 %s335_s21, 4  ;;  %s228_s22 = int_to_ptr.vmem [resolvable:$true] %s227_s22 }
   0xf   :  { %v235_v14 = vld [vmem:[%s416_s2] ss:$0 sm:$0xff]  ;;  %s311_s2 = scalar_lea.vmem %s228_s22, 128  ;;  %p316_p1 = scmp.lt.s32.totalorder %s228_s22, %s228_s22 }
  0x10   :  { %283 = vmatpush3.bf16.msra.mxu1 %v306_v9  ;;  %v241_v22 = vld [vmem:[%s418_s4] ss:$0 sm:$0xff]  ;;  %p312_p0 = scmp.ne.s32.totalorder %s228_s22, %s311_s2  ;;  %p317_p2 = scmp.lt.s32.totalorder %s311_s2, %s311_s2 }
  0x11   :  { %273 = vmatmul.mubr.msk.bf16.vlgmr.msra.gmra.mxu0 %vm62_vm1, %v22_v8  ;;  %284 = vmatprep.subr.bf16.mxu1 %v333_v1 }
  0x12   :  { %p318_p3 = por %p317_p2, %p316_p1 }
  0x14   :  { %285 = vmatpush3.bf16.msra.mxu1 %v307_v10  ;;  %p319_p4 = pnand %p318_p3, %p312_p0 }
  0x15   :  { %286 = vmatprep.subr.bf16.mxu1 %v333_v1 }
  0x18   :  { %287 = vmatpush3.bf16.msra.mxu1 %v308_v11 }
  0x19   :  { %288 = vmatprep.subr.bf16.mxu1 %v333_v1 }
  0x1c   :  { %289 = vmatpush3.bf16.msra.mxu1 %v309_v12 }
  0x1d   :  { %290 = vmatprep.subr.bf16.mxu1 %v333_v1 }
  0x20   :  { %291 = vmatpush3.bf16.msra.mxu1 %v310_v13 }
  0xd1   :  { %v100_v15 = vpop.f32.mrf.mxu0 }
  0xd2   :  { %v101_v16 = vadd.f32 %v235_v14, %v100_v15 }
  0xd3   :  { %v274_v17 = vpop.f32.mrf.mxu0 }
  0xd4   :  { %v106_v18 = vmax.f32 %v101_v16, 0.0 }
  0xd5   :  { %v103_v19 = vpop.f32.mrf.mxu0 }
  0xd6   :  { %v107_v20 = vpack.c.bf16 %v106_v18, %v106_v18 }
  0xd7   :  { %v275_v21 = vpop.f32.mrf.mxu0 }
  0xd8   :  { %293 = vmatmul.mubr.bf16.vlgmr.msra.gmra.mxu1 %v107_v20 }
 0x198   :  { %v213_v23 = vpop.f32.mrf.mxu1 }
 0x199   :  { %v214_v24 = vadd.f32 %v241_v22, %v213_v23 }
 0x19a   :  { %v294_v25 = vpop.f32.mrf.mxu1 }
 0x19b   :  { %220 = vst.msk [vmem:[#allocation2] sm:$0xff] %vm219_vm2, %v214_v24 }
 0x19c   :  { %v216_v26 = vpop.f32.mrf.mxu1 }
 0x19d   :  { %322 = shalt.err (!%p319_p4)
}
 0x19e   :  { %230 = dma.vmem_to_hbm [thread:$0]  %s228_s22, 128, %s419_s5, [#allocation3]   ;;  %v295_v27 = vpop.f32.mrf.mxu1 }
 0x19f   :  { %331 = dma.done.wait [#allocation3], 128  }
 0x1a0   :  { %332 = vsyncadd [#allocation3], 4294967168 }
 0x1a1   :  { %234 = vsyncpa [#allocation3], 1 }

</bundles_post_ra>
